<compile_context>
chip_gen: v6e
topology: v6e:2x2x1
jax: 0.10.0
libtpu: 0.0.40
codegen_flags: <defaults>
</compile_context>

<pallas_src>
import functools

import jax
import jax.numpy as jnp
import numpy as np
from jax.experimental import pallas as pl
from jax.experimental.pallas import tpu as pltpu


def _round_up(x, m):
    return (x + m - 1) // m * m


def embeddings_kernel(tok_sref,        # (N_pad,) int32, SMEM (scalar prefetch)
                      scal_ref,        # (TILE, 4) f32: [age, pos, seg, t2v_mask]
                      seg_tab_ref,     # (8, H_pad) f32 VMEM (rows 0..3 used)
                      t2v_ref,         # (8, H_pad) f32 VMEM: [age_w, age_b, abs_w, abs_b, 0..]
                      alpha_ref,       # (3,) f32 SMEM: ReZero gates
                      tok_tab_hbm,     # (V, H_pad) f32 in HBM (pl.ANY)
                      out_ref,         # (TILE, H_pad) f32
                      gather_buf,      # (TILE, H_pad) f32 VMEM scratch
                      gather_sem,      # DMA semaphore
                      *, tile, h_orig, h_pad):
    base = pl.program_id(0) * tile

    # ---- 1) kick off the token-row gather: one HBM->VMEM DMA per row --------
    # These run while the VPU/EUP compute the Time2Vec / segment terms below.
    @pl.loop(0, tile)
    def _start(i):
        pltpu.make_async_copy(
            tok_tab_hbm.at[tok_sref[base + i]],
            gather_buf.at[i],
            gather_sem,
        ).start()

    # ---- 2) Time2Vec positional embeddings + ReZero residuals ---------------
    age    = scal_ref[:, 0:1]          # (TILE, 1)
    posn   = scal_ref[:, 1:2]
    seg_f  = scal_ref[:, 2:3]
    t2mask = scal_ref[:, 3:4]          # 0.0 for the first 5 positions of each seq

    col = jax.lax.broadcasted_iota(jnp.int32, (tile, h_pad), 1)
    is_lin = col == (h_orig - 1)       # last (original) column = linear w0/b0 term

    a0 = alpha_ref[0]
    a1 = alpha_ref[1]
    a2 = alpha_ref[2]

    proj = age * t2v_ref[0:1, :] + t2v_ref[1:2, :]                 # (TILE, H_pad)
    pos_age = jnp.where(is_lin, proj, jnp.cos(proj)) * t2mask
    acc = a0 * pos_age

    proj = posn * t2v_ref[2:3, :] + t2v_ref[3:4, :]
    pos_abs = jnp.where(is_lin, proj, jnp.sin(proj)) * t2mask
    acc = acc + a1 * pos_abs

    # ---- 3) segment embedding: 4 entries -> VPU compare+select (no MXU) -----
    seg_emb = jnp.zeros((tile, h_pad), jnp.float32)
    for s in range(4):
        sel = (seg_f == float(s)).astype(jnp.float32)              # (TILE, 1)
        seg_emb = seg_emb + sel * seg_tab_ref[s:s + 1, :]
    acc = acc + a2 * seg_emb

    # ---- 4) wait for the gathered token rows, add them, store ---------------
    @pl.loop(0, tile)
    def _wait(i):
        pltpu.make_async_copy(
            tok_tab_hbm.at[0], gather_buf.at[i], gather_sem).wait()

    out_ref[...] = acc + gather_buf[...]
    # TODO(synk): dropout is stochastic at train time; eval-mode identity here.


def embeddings_forward(tokens, position, age, segment, params, *,
                       max_tile_rows=256):
    B, S = tokens.shape
    tok_tab = params["token_table"].astype(jnp.float32)            # (V, H)
    seg_tab = params["seg_table"].astype(jnp.float32)              # (4, H)
    V, H = tok_tab.shape

    H_pad = _round_up(H, 128)                 # lane-dense output blocks
    N = B * S
    TILE = min(max_tile_rows, _round_up(N, 8))
    N_pad = _round_up(N, TILE)

    pad_h = lambda x: jnp.pad(x, ((0, 0), (0, H_pad - H)))

    # Token table stays in HBM (pl.ANY) -> no VMEM budget / double-buffering cost.
    tok_tab_p = pad_h(tok_tab)                                     # (V, H_pad)
    seg_tab_p = jnp.pad(seg_tab, ((0, 8 - seg_tab.shape[0]), (0, H_pad - H)))

    # Time2Vec params packed into one (8, H_pad) block; full rows are [w | w0]
    # and [b | b0] so the linear component sits in column H-1.
    age_w = jnp.concatenate([params["age_w"], params["age_w0"]], axis=-1)
    age_b = jnp.concatenate([params["age_b"], params["age_b0"]], axis=-1)
    abs_w = jnp.concatenate([params["abs_w"], params["abs_w0"]], axis=-1)
    abs_b = jnp.concatenate([params["abs_b"], params["abs_b0"]], axis=-1)
    t2v_rows = jnp.concatenate(
        [age_w, age_b, abs_w, abs_b, jnp.zeros((4, H), jnp.float32)], axis=0)
    t2v_rows = pad_h(t2v_rows)                                     # (8, H_pad)

    # Flatten per-row scalar streams; pack them into a single (N_pad, 4) array.
    tok_flat = jnp.pad(tokens.reshape(-1).astype(jnp.int32), (0, N_pad - N))
    seq_pos = jnp.tile(jnp.arange(S, dtype=jnp.int32), B)          # row -> seq pos
    t2v_mask = (seq_pos >= 5).astype(jnp.float32)                  # pos[:, :5] *= 0
    scal = jnp.stack(
        [age.reshape(-1).astype(jnp.float32),
         position.reshape(-1).astype(jnp.float32),
         segment.reshape(-1).astype(jnp.float32),
         t2v_mask], axis=-1)                                       # (N, 4)
    scal = jnp.pad(scal, ((0, N_pad - N), (0, 0)))

    alphas = params["alphas"].astype(jnp.float32)                  # (3,)

    kernel = functools.partial(
        embeddings_kernel, tile=TILE, h_orig=H, h_pad=H_pad)

    cost = pl.CostEstimate(
        flops=30 * N_pad * H_pad,
        transcendentals=2 * N_pad * H_pad,
        bytes_accessed=(2 * N_pad * H_pad + 16 * H_pad) * 4 + N_pad * 20)

    out = pl.pallas_call(
        kernel,
        out_shape=jax.ShapeDtypeStruct((N_pad, H_pad), jnp.float32),
        grid_spec=pltpu.PrefetchScalarGridSpec(
            num_scalar_prefetch=1,                                 # token ids -> SMEM
            grid=(N_pad // TILE,),
            in_specs=[
                pl.BlockSpec((TILE, 4), lambda t, tok: (t, 0)),    # packed scalars
                pl.BlockSpec((8, H_pad), lambda t, tok: (0, 0)),   # segment table
                pl.BlockSpec((8, H_pad), lambda t, tok: (0, 0)),   # time2vec params
                pl.BlockSpec(memory_space=pltpu.SMEM),             # rezero alphas
                pl.BlockSpec(memory_space=pl.ANY),                 # token table (HBM)
            ],
            out_specs=pl.BlockSpec((TILE, H_pad), lambda t, tok: (t, 0)),
            scratch_shapes=[
                pltpu.VMEM((TILE, H_pad), jnp.float32),            # gathered rows
                pltpu.SemaphoreType.DMA,
            ]),
        compiler_params=pltpu.CompilerParams(
            dimension_semantics=("parallel",)),
        cost_estimate=cost,
    )(tok_flat, scal, seg_tab_p, t2v_rows, alphas, tok_tab_p)

    # Trim row/lane padding; module returns (emb, None) -- we return emb only.
    return out[:N, :H].reshape(B, S, H)


def embeddings_ref(tokens, position, age, segment, params):
    """Pure-JAX reference matching the PyTorch forward (in_features == 1)."""
    def t2v(tau, f, w, b, w0, b0):
        v1 = f(tau * w[0] + b[0])      # tau @ w with K=1 == elementwise
        v2 = tau * w0[0] + b0[0]
        return jnp.concatenate([v1, v2], axis=-1)

    emb = params["token_table"][tokens]
    pos_age = t2v(age.astype(jnp.float32)[..., None], jnp.cos,
                  params["age_w"], params["age_b"],
                  params["age_w0"], params["age_b0"])
    pos_age = pos_age.at[:, :5].multiply(0.0)
    emb = emb + params["alphas"][0] * pos_age
    pos_abs = t2v(position.astype(jnp.float32)[..., None], jnp.sin,
                  params["abs_w"], params["abs_b"],
                  params["abs_w0"], params["abs_b0"])
    pos_abs = pos_abs.at[:, :5].multiply(0.0)
    emb = emb + params["alphas"][1] * pos_abs
    seg_emb = params["seg_table"][segment]
    emb = emb + params["alphas"][2] * seg_emb
    return emb


def make_params(key, vocab_size, hidden_size, dtype=jnp.float32):
    d = 0.01
    ks = jax.random.split(key, 10)
    u = lambda k, shape: jax.random.uniform(k, shape, dtype, minval=-d, maxval=d)
    return {
        "token_table": u(ks[0], (vocab_size, hidden_size)),
        "seg_table": u(ks[1], (4, hidden_size)),
        "age_w": u(ks[2], (1, hidden_size - 1)),
        "age_b": u(ks[3], (1, hidden_size - 1)),
        "age_w0": u(ks[4], (1, 1)),
        "age_b0": u(ks[5], (1, 1)),
        "abs_w": u(ks[6], (1, hidden_size - 1)),
        "abs_b": u(ks[7], (1, hidden_size - 1)),
        "abs_w0": u(ks[8], (1, 1)),
        "abs_b0": u(ks[9], (1, 1)),
        # ReZero(simple=True, fill=0): one scalar gate per residual, init 0.
        "alphas": jnp.zeros((3,), dtype),
    }
    # TODO(synk): optional Center parametrization of the token table
    # (parametrize_emb) is not implemented; assumed disabled.


if __name__ == "__main__":
    B, S, H, V = 2, 8, 32, 64

    key = jax.random.PRNGKey(0)
    kp, kt, kpos, kage, kseg = jax.random.split(key, 5)
    params = make_params(kp, V, H)
    # Use non-zero ReZero gates so every branch of the kernel is exercised.
    params["alphas"] = jnp.array([0.37, -0.21, 0.55], jnp.float32)

    tokens = jax.random.randint(kt, (B, S), 0, V, dtype=jnp.int32)
    position = jax.random.randint(kpos, (B, S), 0, 1000, dtype=jnp.int32)
    age = jax.random.uniform(kage, (B, S), jnp.float32, 0.0, 100.0)
    segment = jax.random.randint(kseg, (B, S), 0, 4, dtype=jnp.int32)

    out = embeddings_forward(tokens, position, age, segment, params)
    out = jax.block_until_ready(out)

    ref = embeddings_ref(tokens, position, age, segment, params)
    np.testing.assert_allclose(np.asarray(out), np.asarray(ref),
                               rtol=1e-5, atol=1e-5)
    assert out.shape == (B, S, H) and out.dtype == jnp.float32
    print("KERNEL_OK")
</pallas_src>

<mosaic_0001>
module attributes {stable_mosaic.version = 11 : i64} {
  func.func @embeddings_kernel(%arg0: i32, %arg1: memref<16xi32, #tpu.memory_space<smem>>, %arg2: memref<16x4xf32, #tpu.memory_space<vmem>>, %arg3: memref<8x128xf32, #tpu.memory_space<vmem>>, %arg4: memref<8x128xf32, #tpu.memory_space<vmem>>, %arg5: memref<3xf32, #tpu.memory_space<smem>>, %arg6: memref<64x128xf32, #tpu.memory_space<any>>, %arg7: memref<16x128xf32, #tpu.memory_space<vmem>>, %arg8: memref<16x128xf32, #tpu.memory_space<vmem>>, %arg9: memref<!tpu.dma_semaphore, #tpu.memory_space<semaphore_mem>>) attributes {dimension_semantics = [#tpu.dimension_semantics<parallel>], iteration_bounds = array<i64: 1>, scalar_prefetch = 1 : i64, scratch_operands = 2 : i64, tpu.core_type = #tpu.core_type<tc>, window_params = [{transform_indices = @transform_0, window_bounds = array<i64: 16, 4>}, {pipeline_mode = #tpu.pipeline_mode<synchronous>, transform_indices = @transform_1, window_bounds = array<i64: 8, 128>}, {pipeline_mode = #tpu.pipeline_mode<synchronous>, transform_indices = @transform_2, window_bounds = array<i64: 8, 128>}, {transform_indices = @transform_3, window_bounds = array<i64: 3>}, {}, {transform_indices = @transform_5, window_bounds = array<i64: 16, 128>}]} {
    %c16_i32 = arith.constant 16 : i32
    %0 = arith.muli %arg0, %c16_i32 : i32
    %c0_i32 = arith.constant 0 : i32
    %c16_i32_0 = arith.constant 16 : i32
    %1 = arith.addi %c0_i32, %c16_i32_0 : i32
    %c1_i32 = arith.constant 1 : i32
    scf.for %arg10 = %c0_i32 to %1 step %c1_i32  : i32 {
      %c1_i32_37 = arith.constant 1 : i32
      %83 = arith.muli %arg10, %c1_i32_37 : i32
      %c0_i32_38 = arith.constant 0 : i32
      %84 = arith.addi %c0_i32_38, %83 : i32
      %85 = arith.addi %0, %84 : i32
      %86 = arith.index_cast %85 : i32 to index
      %87 = memref.load %arg1[%86] : memref<16xi32, #tpu.memory_space<smem>>
      %c0_i32_39 = arith.constant 0 : i32
      %88 = tpu.memref_slice %arg6[%87, %c0_i32_39] : memref<64x128xf32, #tpu.memory_space<any>> -> memref<1x128xf32, #tpu.memory_space<any>>
      %89 = tpu.memref_squeeze %88 : memref<1x128xf32, #tpu.memory_space<any>> -> memref<128xf32, #tpu.memory_space<any>>
      %c0_i32_40 = arith.constant 0 : i32
      %90 = tpu.memref_slice %arg8[%84, %c0_i32_40] : memref<16x128xf32, #tpu.memory_space<vmem>> -> memref<1x128xf32, #tpu.memory_space<vmem>>
      %91 = tpu.memref_squeeze %90 : memref<1x128xf32, #tpu.memory_space<vmem>> -> memref<128xf32, #tpu.memory_space<vmem>>
      tpu.enqueue_dma source(%89 : memref<128xf32, #tpu.memory_space<any>>) target(%91 : memref<128xf32, #tpu.memory_space<vmem>>) target_semaphore(%arg9 : memref<!tpu.dma_semaphore, #tpu.memory_space<semaphore_mem>>)
    }
    %c16_i32_1 = arith.constant 16 : i32
    %c0 = arith.constant 0 : index
    %c0_2 = arith.constant 0 : index
    %2 = vector.load %arg2[%c0, %c0_2] : memref<16x4xf32, #tpu.memory_space<vmem>>, vector<16x1xf32>
    %c0_3 = arith.constant 0 : index
    %c1 = arith.constant 1 : index
    %3 = vector.load %arg2[%c0_3, %c1] : memref<16x4xf32, #tpu.memory_space<vmem>>, vector<16x1xf32>
    %c0_4 = arith.constant 0 : index
    %c2 = arith.constant 2 : index
    %4 = vector.load %arg2[%c0_4, %c2] : memref<16x4xf32, #tpu.memory_space<vmem>>, vector<16x1xf32>
    %c0_5 = arith.constant 0 : index
    %c3 = arith.constant 3 : index
    %5 = vector.load %arg2[%c0_5, %c3] : memref<16x4xf32, #tpu.memory_space<vmem>>, vector<16x1xf32>
    %6 = tpu.iota {dimensions = array<i32: 1>} : vector<16x128xi32>
    %c31_i32 = arith.constant 31 : i32
    %7 = vector.broadcast %c31_i32 : i32 to vector<16x128xi32>
    %8 = arith.cmpi eq, %6, %7 : vector<16x128xi32>
    %c0_6 = arith.constant 0 : index
    %9 = memref.load %arg5[%c0_6] : memref<3xf32, #tpu.memory_space<smem>>
    %c1_7 = arith.constant 1 : index
    %10 = memref.load %arg5[%c1_7] : memref<3xf32, #tpu.memory_space<smem>>
    %c2_8 = arith.constant 2 : index
    %11 = memref.load %arg5[%c2_8] : memref<3xf32, #tpu.memory_space<smem>>
    %c0_9 = arith.constant 0 : index
    %c0_10 = arith.constant 0 : index
    %12 = vector.load %arg4[%c0_9, %c0_10] : memref<8x128xf32, #tpu.memory_space<vmem>>, vector<1x128xf32>
    %13 = vector.broadcast %2 : vector<16x1xf32> to vector<16x128xf32>
    %14 = vector.broadcast %12 : vector<1x128xf32> to vector<16x128xf32>
    %15 = arith.mulf %13, %14 : vector<16x128xf32>
    %c1_11 = arith.constant 1 : index
    %c0_12 = arith.constant 0 : index
    %16 = vector.load %arg4[%c1_11, %c0_12] : memref<8x128xf32, #tpu.memory_space<vmem>>, vector<1x128xf32>
    %17 = vector.broadcast %16 : vector<1x128xf32> to vector<16x128xf32>
    %18 = arith.addf %15, %17 : vector<16x128xf32>
    %19 = math.cos %18 : vector<16x128xf32>
    %20 = arith.select %8, %18, %19 : vector<16x128xi1>, vector<16x128xf32>
    %21 = vector.broadcast %5 : vector<16x1xf32> to vector<16x128xf32>
    %22 = arith.mulf %20, %21 : vector<16x128xf32>
    %23 = vector.broadcast %9 : f32 to vector<16x128xf32>
    %24 = arith.mulf %23, %22 : vector<16x128xf32>
    %c2_13 = arith.constant 2 : index
    %c0_14 = arith.constant 0 : index
    %25 = vector.load %arg4[%c2_13, %c0_14] : memref<8x128xf32, #tpu.memory_space<vmem>>, vector<1x128xf32>
    %26 = vector.broadcast %3 : vector<16x1xf32> to vector<16x128xf32>
    %27 = vector.broadcast %25 : vector<1x128xf32> to vector<16x128xf32>
    %28 = arith.mulf %26, %27 : vector<16x128xf32>
    %c3_15 = arith.constant 3 : index
    %c0_16 = arith.constant 0 : index
    %29 = vector.load %arg4[%c3_15, %c0_16] : memref<8x128xf32, #tpu.memory_space<vmem>>, vector<1x128xf32>
    %30 = vector.broadcast %29 : vector<1x128xf32> to vector<16x128xf32>
    %31 = arith.addf %28, %30 : vector<16x128xf32>
    %32 = math.sin %31 : vector<16x128xf32>
    %33 = arith.select %8, %31, %32 : vector<16x128xi1>, vector<16x128xf32>
    %34 = vector.broadcast %5 : vector<16x1xf32> to vector<16x128xf32>
    %35 = arith.mulf %33, %34 : vector<16x128xf32>
    %36 = vector.broadcast %10 : f32 to vector<16x128xf32>
    %37 = arith.mulf %36, %35 : vector<16x128xf32>
    %38 = arith.addf %24, %37 : vector<16x128xf32>
    %cst = arith.constant 0.000000e+00 : f32
    %39 = vector.broadcast %cst : f32 to vector<16x128xf32>
    %cst_17 = arith.constant 0.000000e+00 : f32
    %40 = vector.broadcast %cst_17 : f32 to vector<16x1xf32>
    %41 = arith.cmpf oeq, %4, %40 : vector<16x1xf32>
    %42 = arith.extui %41 : vector<16x1xi1> to vector<16x1xi32>
    %43 = arith.sitofp %42 : vector<16x1xi32> to vector<16x1xf32>
    %c0_18 = arith.constant 0 : index
    %c0_19 = arith.constant 0 : index
    %44 = vector.load %arg3[%c0_18, %c0_19] : memref<8x128xf32, #tpu.memory_space<vmem>>, vector<1x128xf32>
    %45 = vector.broadcast %43 : vector<16x1xf32> to vector<16x128xf32>
    %46 = vector.broadcast %44 : vector<1x128xf32> to vector<16x128xf32>
    %47 = arith.mulf %45, %46 : vector<16x128xf32>
    %48 = arith.addf %39, %47 : vector<16x128xf32>
    %cst_20 = arith.constant 1.000000e+00 : f32
    %49 = vector.broadcast %cst_20 : f32 to vector<16x1xf32>
    %50 = arith.cmpf oeq, %4, %49 : vector<16x1xf32>
    %51 = arith.extui %50 : vector<16x1xi1> to vector<16x1xi32>
    %52 = arith.sitofp %51 : vector<16x1xi32> to vector<16x1xf32>
    %c1_21 = arith.constant 1 : index
    %c0_22 = arith.constant 0 : index
    %53 = vector.load %arg3[%c1_21, %c0_22] : memref<8x128xf32, #tpu.memory_space<vmem>>, vector<1x128xf32>
    %54 = vector.broadcast %52 : vector<16x1xf32> to vector<16x128xf32>
    %55 = vector.broadcast %53 : vector<1x128xf32> to vector<16x128xf32>
    %56 = arith.mulf %54, %55 : vector<16x128xf32>
    %57 = arith.addf %48, %56 : vector<16x128xf32>
    %cst_23 = arith.constant 2.000000e+00 : f32
    %58 = vector.broadcast %cst_23 : f32 to vector<16x1xf32>
    %59 = arith.cmpf oeq, %4, %58 : vector<16x1xf32>
    %60 = arith.extui %59 : vector<16x1xi1> to vector<16x1xi32>
    %61 = arith.sitofp %60 : vector<16x1xi32> to vector<16x1xf32>
    %c2_24 = arith.constant 2 : index
    %c0_25 = arith.constant 0 : index
    %62 = vector.load %arg3[%c2_24, %c0_25] : memref<8x128xf32, #tpu.memory_space<vmem>>, vector<1x128xf32>
    %63 = vector.broadcast %61 : vector<16x1xf32> to vector<16x128xf32>
    %64 = vector.broadcast %62 : vector<1x128xf32> to vector<16x128xf32>
    %65 = arith.mulf %63, %64 : vector<16x128xf32>
    %66 = arith.addf %57, %65 : vector<16x128xf32>
    %cst_26 = arith.constant 3.000000e+00 : f32
    %67 = vector.broadcast %cst_26 : f32 to vector<16x1xf32>
    %68 = arith.cmpf oeq, %4, %67 : vector<16x1xf32>
    %69 = arith.extui %68 : vector<16x1xi1> to vector<16x1xi32>
    %70 = arith.sitofp %69 : vector<16x1xi32> to vector<16x1xf32>
    %c3_27 = arith.constant 3 : index
    %c0_28 = arith.constant 0 : index
    %71 = vector.load %arg3[%c3_27, %c0_28] : memref<8x128xf32, #tpu.memory_space<vmem>>, vector<1x128xf32>
    %72 = vector.broadcast %70 : vector<16x1xf32> to vector<16x128xf32>
    %73 = vector.broadcast %71 : vector<1x128xf32> to vector<16x128xf32>
    %74 = arith.mulf %72, %73 : vector<16x128xf32>
    %75 = arith.addf %66, %74 : vector<16x128xf32>
    %76 = vector.broadcast %11 : f32 to vector<16x128xf32>
    %77 = arith.mulf %76, %75 : vector<16x128xf32>
    %78 = arith.addf %38, %77 : vector<16x128xf32>
    %c0_i32_29 = arith.constant 0 : i32
    %c16_i32_30 = arith.constant 16 : i32
    %79 = arith.addi %c0_i32_29, %c16_i32_30 : i32
    %c1_i32_31 = arith.constant 1 : i32
    scf.for %arg10 = %c0_i32_29 to %79 step %c1_i32_31  : i32 {
      %c1_i32_37 = arith.constant 1 : i32
      %83 = arith.muli %arg10, %c1_i32_37 : i32
      %c0_i32_38 = arith.constant 0 : i32
      %84 = arith.addi %c0_i32_38, %83 : i32
      %c0_i32_39 = arith.constant 0 : i32
      %c0_i32_40 = arith.constant 0 : i32
      %85 = tpu.memref_slice %arg6[%c0_i32_39, %c0_i32_40] : memref<64x128xf32, #tpu.memory_space<any>> -> memref<1x128xf32, #tpu.memory_space<any>>
      %86 = tpu.memref_squeeze %85 : memref<1x128xf32, #tpu.memory_space<any>> -> memref<128xf32, #tpu.memory_space<any>>
      %c0_i32_41 = arith.constant 0 : i32
      %87 = tpu.memref_slice %arg8[%84, %c0_i32_41] : memref<16x128xf32, #tpu.memory_space<vmem>> -> memref<1x128xf32, #tpu.memory_space<vmem>>
      %88 = tpu.memref_squeeze %87 : memref<1x128xf32, #tpu.memory_space<vmem>> -> memref<128xf32, #tpu.memory_space<vmem>>
      tpu.wait_dma2 semaphore(%arg9 : memref<!tpu.dma_semaphore, #tpu.memory_space<semaphore_mem>>) src(%86 : memref<128xf32, #tpu.memory_space<any>>) dst(%88 : memref<128xf32, #tpu.memory_space<vmem>>)
    }
    %c16_i32_32 = arith.constant 16 : i32
    %c0_33 = arith.constant 0 : index
    %c0_34 = arith.constant 0 : index
    %80 = vector.load %arg8[%c0_33, %c0_34] : memref<16x128xf32, #tpu.memory_space<vmem>>, vector<16x128xf32>
    %81 = arith.addf %78, %80 : vector<16x128xf32>
    %c0_35 = arith.constant 0 : index
    %c0_36 = arith.constant 0 : index
    %82 = vector.load %arg7[%c0_35, %c0_36] : memref<16x128xf32, #tpu.memory_space<vmem>>, vector<16x128xf32>
    tpu.vector_store %arg7[%c0_35, %c0_36], %81 {strides = array<i32>} : memref<16x128xf32, #tpu.memory_space<vmem>>, vector<16x128xf32>,
    return
  }
  func.func @transform_0(%arg0: i32, %arg1: memref<16xi32, #tpu.memory_space<smem>>) -> (i32, i32) {
    %c0_i32 = arith.constant 0 : i32
    %c0_i32_0 = arith.constant 0 : i32
    return %arg0, %c0_i32 : i32, i32
  }
  func.func @transform_1(%arg0: i32, %arg1: memref<16xi32, #tpu.memory_space<smem>>) -> (i32, i32) {
    %c0_i32 = arith.constant 0 : i32
    %c0_i32_0 = arith.constant 0 : i32
    %c0_i32_1 = arith.constant 0 : i32
    return %c0_i32, %c0_i32_0 : i32, i32
  }
  func.func @transform_2(%arg0: i32, %arg1: memref<16xi32, #tpu.memory_space<smem>>) -> (i32, i32) {
    %c0_i32 = arith.constant 0 : i32
    %c0_i32_0 = arith.constant 0 : i32
    %c0_i32_1 = arith.constant 0 : i32
    return %c0_i32, %c0_i32_0 : i32, i32
  }
  func.func @transform_3(%arg0: i32, %arg1: memref<16xi32, #tpu.memory_space<smem>>) -> i32 {
    %c0_i32 = arith.constant 0 : i32
    %c0_i32_0 = arith.constant 0 : i32
    return %c0_i32 : i32
  }
  func.func @transform_5(%arg0: i32, %arg1: memref<16xi32, #tpu.memory_space<smem>>) -> (i32, i32) {
    %c0_i32 = arith.constant 0 : i32
    %c0_i32_0 = arith.constant 0 : i32
    return %arg0, %c0_i32 : i32, i32
  }
}

</mosaic_0001>

<bundles_post_ra>
// kernel: tpu_custom_call.1
= control target key start
LH: loop header
LB: loop body
LE: loop exit
PB: predicated region body
PF: predicated region fallthrough
CT: control target
= control target key end

     0   :  { %s1456_s0 = inlined_call_operand.vmem [shape: s32[16], index: 0, kind: input, shape index: {}]   ;;  %s1457_s1 = inlined_call_operand.vmem [shape: f32[16,4], index: 1, kind: input, shape index: {}]   ;;  %s1458_s2 = inlined_call_operand.vmem [shape: f32[8,128], index: 2, kind: input, shape index: {}]   ;;  %s1459_s3 = inlined_call_operand.vmem [shape: f32[8,128], index: 3, kind: input, shape index: {}]   ;;  %s1460_s4 = inlined_call_operand.vmem [shape: f32[3], index: 4, kind: input, shape index: {}]   ;;  %s1461_s5 = inlined_call_operand.hbm [shape: f32[64,128], index: 5, kind: input, shape index: {}]   ;;  %s1462_s6 = inlined_call_operand.hbm [shape: f32[16,128], index: 6, kind: output, shape index: {}]  }
   0x1   :  { %s11_s23 = sshll.u32 %s1456_s0, 4  ;;  %s12_s23 = int_to_ptr.vmem [resolvable:$true] %s11_s23 }
   0x2   :  { %s837_s24 = scalar_lea.vmem %s12_s23, 16  ;;  %p842_p1 = scmp.lt.s32.totalorder %s12_s23, %s12_s23 }
   0x3   :  { %p838_p0 = scmp.ne.s32.totalorder %s12_s23, %s837_s24  ;;  %p843_p2 = scmp.lt.s32.totalorder %s837_s24, %s837_s24 }
   0x5   :  { %p844_p3 = por %p843_p2, %p842_p1 }
   0x7   :  { %p845_p4 = pnand %p844_p3, %p838_p0 }
   0x9   :  { %848 = shalt.err (!%p845_p4)  }
   0xa   :  { %s927_s25 = smov [#allocation5]  }
   0xb   :  { %14 = dma.vmem_to_smem %s12_s23, 16, %s927_s25, [#allocation4] }
   0xc   :  { %911 = dma.done.wait [#allocation4], 16 }
   0xd   :  { %912 = vsyncadd [#allocation4], 4294967280 }
   0xe   :  { %16 = sfence }
   0xf   :  { %17 = vsyncpa [#allocation8], 0 }
  0x10   :  { %18 = vsyncpa [#allocation7], 0  ;;  %s31_s28 = sshll.u32 %s1460_s4, 4  ;;  %s32_s28 = int_to_ptr.vmem [resolvable:$true] %s31_s28 }
  0x11   :  { %s849_s0 = scalar_lea.vmem %s32_s28, 16  ;;  %p854_p6 = scmp.lt.s32.totalorder %s32_s28, %s32_s28 }
  0x12   :  { %p850_p5 = scmp.ne.s32.totalorder %s32_s28, %s849_s0  ;;  %p855_p7 = scmp.lt.s32.totalorder %s849_s0, %s849_s0 }
  0x14   :  { %p856_p8 = por %p855_p7, %p854_p6 }
  0x16   :  { %p857_p9 = pnand %p856_p8, %p850_p5 }
  0x18   :  { %860 = shalt.err (!%p857_p9)
}
  0x19   :  { %s928_s29 = smov [#allocation6]  }
  0x1a   :  { %34 = dma.vmem_to_smem %s32_s28, 16, %s928_s29, [#allocation8]  }
  0x1b   :  { %913 = dma.done.wait [#allocation8], 16  }
  0x1c   :  { %914 = vsyncadd [#allocation8], 4294967280 }
  0x1d   :  { %38 = sfence }
  0x1e   :  { %s985_s30 = smov 0  }
  0x1f LB: > { %s47_s4 = sld [smem:[#allocation5 + %s921_s30]]  ;;  %s50_s7 = scalar_lea.vmem [#allocation2], %s921_s30  ;;  %s921_s30 = sphi %s985_s30, %s45_s30  }
  0x20   : > { %s58_s8 = sshll.u32 %s50_s7, 4  ;;  %s863_s16 = scalar_lea.hbm %s1461_s5, 1024  ;;  %s59_s8 = int_to_ptr.vmem [resolvable:$true] %s58_s8 }
  0x25   : > { %s709_s9 = sshll.u32 %s47_s4, 4 }
  0x26   : > { %s49_s12 = scalar_lea.hbm %s1461_s5, %s709_s9 }
  0x27   : > { %s861_s13 = scalar_lea.hbm %s49_s12, 16  ;;  %p864_p11 = scmp.lt.s32.totalorder %s49_s12, %s1461_s5 }
  0x28   : > { %p862_p10 = scmp.ne.s32.totalorder %s49_s12, %s861_s13  ;;  %p865_p12 = scmp.lt.s32.totalorder %s863_s16, %s861_s13 }
  0x2a   : > { %p866_p13 = por %p865_p12, %p864_p11 }
  0x2c   : > { %p867_p0 = pnand %p866_p13, %p862_p10 }
  0x2e   : > { %870 = shalt.err (!%p867_p0)  }
  0x2f   : > { %s871_s19 = scalar_lea.vmem %s59_s8, 16  ;;  %s929_s20 = smov [#allocation2]  }
  0x30   : > { %p872_p1 = scmp.ne.s32.totalorder %s59_s8, %s871_s19  ;;  %s873_s21 = sshll.u32 %s929_s20, 4  ;;  %s874_s21 = int_to_ptr.vmem [resolvable:$false] %s873_s21 }
  0x31   : > { %s875_s22 = scalar_lea.vmem %s874_s21, 256  ;;  %p876_p2 = scmp.lt.s32.totalorder %s59_s8, %s874_s21 }
  0x32   : > { %p877_p3 = scmp.lt.s32.totalorder %s875_s22, %s871_s19 }
  0x34   : > { %p878_p4 = por %p877_p3, %p876_p2 }
  0x36   : > { %p879_p5 = pnand %p878_p4, %p872_p1 }
  0x38   : > { %882 = shalt.err (!%p879_p5)  }
  0x39   : > { %61 = dma.hbm_to_vmem [thread:$0]  %s49_s12, 16, %s59_s8, [#allocation3] }
  0x3a   : > { %s45_s30 = sadd.s32 1, %s921_s30  }
  0x3b   : > { %p42_p6 = scmp.ge.s32.totalorder %s45_s30, 16  }
  0x3c   :  { %v62_v0 = vld [vmem:[%s1457_s1] sm:$0xff] (%p42_p6)  ;;  %v63_v1 = vld [vmem:[%s1457_s1 + $0x8] sm:$0xff] (%p42_p6)  ;;  %v930_v2 = vmov (%p42_p6), 1   ;;  %v931_v3 = vmov (%p42_p6), 0   ;;  %v932_v4 = vmov (%p42_p6), 0.0   ;;  %v933_v13 = vmov (%p42_p6), 2  }
  0x3d   :  { %44 = sbr.rel (!%p42_p6) target bundleno = 31 (0x1f), region = 60  ;;  %794 = vset.pattern.permute.xlu1 (%p42_p6), %v930_v2  ;;  %793 = vset.pattern.permute.xlu0 (%p42_p6), %v931_v3  ;;  %vm579_vm0 = vcmp.eq.f32.partialorder (%p42_p6), %v62_v0, 1.0  ;;  %vm580_vm1 = vcmp.eq.f32.partialorder (%p42_p6), %v63_v1, 1.0  ;;  %vm554_vm2 = vcmp.eq.f32.partialorder (%p42_p6), %v62_v0, 0.0  ;;  %vm555_vm3 = vcmp.eq.f32.partialorder (%p42_p6), %v63_v1, 0.0  ;;  %s1365_s14 = sld [smem:[#allocation6]] (%p42_p6) }
  0x3e   :  { %317 = vperm.xlu1 (%p42_p6), %794, %v62_v0   ;;  %73 = vperm.xlu0 (%p42_p6), %793, %v62_v0   ;;  %v735_v5 = vsel (%p42_p6), %vm579_vm0, 1.0, %v932_v4  ;;  %v736_v6 = vsel (%p42_p6), %vm580_vm1, 1.0, %v932_v4  ;;  %v732_v7 = vsel (%p42_p6), %vm554_vm2, 1.0, %v932_v4  ;;  %vm604_vm4 = vcmp.eq.f32.partialorder (%p42_p6), %v62_v0, 2.0  ;;  %v712_v19 = vld [vmem:[%s1459_s3] ss:$0 sm:$0xff] (%p42_p6) }
  0x3f   :  { %vm605_vm5 = vcmp.eq.f32.partialorder (%p42_p6), %v63_v1, 2.0  ;;  %v733_v8 = vsel (%p42_p6), %vm555_vm3, 1.0, %v932_v4  ;;  %v802_v9 = vpack.i.bf16 (%p42_p6), %v736_v6, %v735_v5  ;;  %v738_v11 = vsel (%p42_p6), %vm604_vm4, 1.0, %v932_v4  ;;  %v722_v23 = vld [vmem:[%s1459_s3 + $0x2] ss:$0 sm:$0xff] (%p42_p6)  ;;  %s1368_s15 = sld [smem:[#allocation6 + $0x2]] (%p42_p6) }
  0x40   :  { %v796_v10 = vpack.i.bf16 (%p42_p6), %v733_v8, %v732_v7  ;;  %v739_v12 = vsel (%p42_p6), %vm605_vm5, 1.0, %v932_v4  ;;  %vm629_vm6 = vcmp.eq.f32.partialorder (%p42_p6), %v62_v0, 3.0  ;;  %vm630_vm7 = vcmp.eq.f32.partialorder (%p42_p6), %v63_v1, 3.0  ;;  %v713_v24 = vld [vmem:[%s1459_s3 + $0x1] ss:$0 sm:$0xff] (%p42_p6)  ;;  %s1373_s16 = sld [smem:[#allocation6 + $0x1]] (%p42_p6) }
  0x41   :  { %v807_v14 = vpack.i.bf16 (%p42_p6), %v739_v12, %v738_v11  ;;  %v934_v15 = vmov (%p42_p6), 3   ;;  %v741_v16 = vsel (%p42_p6), %vm629_vm6, 1.0, %v932_v4  ;;  %v742_v17 = vsel (%p42_p6), %vm630_vm7, 1.0, %v932_v4  ;;  %v723_v31 = vld [vmem:[%s1459_s3 + $0x3] ss:$0 sm:$0xff] (%p42_p6) }
  0x42   :  { %321 = vperm.xlu1 %794, %v63_v1   ;;  %78 = vperm.xlu0 %793, %v63_v1   ;;  %v815_v18 = vpack.i.bf16 %v742_v17, %v741_v16  ;;  %v936_v2 = vmov 2475754826   ;;  %v937_v4 = vmov 2131351028   ;;  %v938_v8 = vmov 2102212464  }
  0x43   :  { %v939_v11 = vmov 920167782  }
  0x46   :  { %801 = vset.pattern.permute.xlu1 %v933_v13  ;;  %795 = vset.pattern.permute.xlu0 %v933_v13 }
  0x47   :  { %803 = vperm.xlu1 %801, %v802_v9   ;;  %797 = vperm.xlu0 %795, %v796_v10  }
  0x4b   :  { %808 = vperm.xlu1 %801, %v807_v14   ;;  %812 = vset.pattern.permute.xlu0 %v934_v15  ;;  %v940_v14 = vmov 1326507024  }
  0x4c   :  { %303 = vperm.xlu0 %812, %v62_v0   ;;  %v935_v0 = vmov 683565275  }
  0x4f   :  { %813 = vset.pattern.permute.xlu1 %v934_v15 }
  0x50   :  { %307 = vperm.xlu1 %813, %v63_v1   ;;  %820 = vset.pattern.permute.xlu0 %v933_v13 }
  0x54   :  { %814 = vset.pattern.permute.xlu1 %v933_v13 }
  0x55   :  { %816 = vperm.xlu1 %814, %v815_v18  }
  0xb9   :  { %v318_v20 = vpop.permute.xlu1 %317  ;;  %v74_v21 = vpop.permute.xlu0 %73 }
  0xba   :  { %v85_v22 = vmul.f32 %v712_v19, %v74_v21  ;;  %v328_v27 = vmul.f32 %v722_v23, %v318_v20 }
  0xbc   :  { %v1019_v28 = vadd.f32 %v713_v24, %v85_v22  ;;  %v1028_v34 = vadd.f32 %v723_v31, %v328_v27 }
  0xbd   :  { %v322_v25 = vpop.permute.xlu1 %321  ;;  %v79_v26 = vpop.permute.xlu0 %78 }
  0xbe   :  { %v329_v29 = vmul.f32 %v722_v23, %v322_v25  ;;  %v86_v30 = vmul.f32 %v712_v19, %v79_v26  ;;  %v97_v35 = vand.u32 2139095040, %v1019_v28  ;;  %v340_v41 = vand.u32 2139095040, %v1028_v34 }
  0xc0   :  { %v1024_v32 = vadd.f32 %v723_v31, %v329_v29  ;;  %v1026_v33 = vadd.f32 %v713_v24, %v86_v30  ;;  %v98_v42 = vshrl.u32 %v97_v35, 23  ;;  %v341_v48 = vshrl.u32 %v340_v41, 23 }
  0xc2   :  { %v444_v36 = vand.u32 2139095040, %v1024_v32  ;;  %v200_v37 = vand.u32 2139095040, %v1026_v33  ;;  %v197_v38 = vand.u32 2147483647, %v1026_v33  ;;  %v714_v49 = vadd.s32 4294967169, %v98_v42 }
  0xc3   :  { %v441_v51 = vand.u32 2147483647, %v1024_v32  ;;  %v1040_v56 = vadd.s32 4294967169, %v341_v48  ;;  %vm199_vm6 = vcmp.lt.s32.totalorder %v1026_v33, 0 }
  0xc4   :  { %v445_v39 = vshrl.u32 %v444_v36, 23  ;;  %v201_v40 = vshrl.u32 %v200_v37, 23  ;;  %v204_v45 = vand.u32 8388607, %v197_v38  ;;  %v1042_v57 = vadd.s32 1, %v714_v49 }
  0xc5   :  { %v1050_v62 = vand.u32 8388607, %v441_v51 }
  0xc6   :  { %v728_v43 = vadd.s32 4294967169, %v445_v39  ;;  %v718_v44 = vadd.s32 4294967169, %v201_v40  ;;  %v205_v50 = vor.u32 8388608, %v204_v45  ;;  %vm105_vm14 = vcmp.gt.s32.totalorder %v1042_v57, 0 }
  0xc7   :  { %v449_v35 = vor.u32 8388608, %v1050_v62 }
  0xc8   :  { %v451_v46 = vadd.s32 1, %v728_v43  ;;  %v207_v47 = vadd.s32 1, %v718_v44  ;;  %v1046_v61 = vshll.u32 %v205_v50, 8 }
  0xca   :  { %vm452_vm8 = vcmp.gt.s32.totalorder %v451_v46, 0  ;;  %vm208_vm9 = vcmp.gt.s32.totalorder %v207_v47, 0 }
  0xcb   :  { %v453_v52 = vsel %vm452_vm8, %v451_v46, 0  ;;  %v209_v53 = vsel %vm208_vm9, %v207_v47, 0 }
  0xcc   :  { %v1038_v54 = vand.u32 31, %v453_v52  ;;  %v211_v55 = vand.u32 31, %v209_v53  ;;  %v210_v58 = vshrl.u32 %v209_v53, 5  ;;  %v1044_v59 = vshrl.u32 %v453_v52, 5 }
  0xce   :  { %v212_v60 = vsub.s32 32, %v211_v55  ;;  %v456_v63 = vsub.s32 32, %v1038_v54  ;;  %v214_v1 = vshll.u32 %v935_v0, %v211_v55  ;;  %v217_v3 = vshll.u32 %v936_v2, %v211_v55 }
  0xcf   :  { %v220_v5 = vshll.u32 %v937_v4, %v211_v55  ;;  %v223_v10 = vshll.u32 %v938_v8, %v211_v55  ;;  %v226_v13 = vshll.u32 %v939_v11, %v211_v55  ;;  %vm229_vm10 = vcmp.lt.s32.totalorder %v210_v58, 1 }
  0xd0   :  { %v215_v6 = vshrl.u32 %v936_v2, %v212_v60  ;;  %v218_v7 = vshrl.u32 %v937_v4, %v212_v60  ;;  %v221_v9 = vshrl.u32 %v938_v8, %v212_v60  ;;  %v224_v12 = vshrl.u32 %v939_v11, %v212_v60 }
  0xd1   :  { %v227_v15 = vshrl.u32 %v940_v14, %v212_v60  ;;  %v213_v16 = vshrl.u32 %v935_v0, %v212_v60  ;;  %vm231_vm11 = vcmp.lt.s32.totalorder %v210_v58, 3  ;;  %vm232_vm12 = vcmp.lt.s32.totalorder %v210_v58, 4 }
  0xd2   :  { %v216_v17 = vor.u32 %v215_v6, %v214_v1  ;;  %v219_v18 = vor.u32 %v218_v7, %v217_v3  ;;  %v222_v19 = vor.u32 %v221_v9, %v220_v5  ;;  %v225_v20 = vor.u32 %v224_v12, %v223_v10 }
  0xd3   :  { %v228_v21 = vor.u32 %v227_v15, %v226_v13  ;;  %vm230_vm13 = vcmp.lt.s32.totalorder %v210_v58, 2  ;;  %v459_v36 = vshrl.u32 %v936_v2, %v456_v63  ;;  %v458_v41 = vshll.u32 %v935_v0, %v1038_v54 }
  0xd4   :  { %v233_v22 = vsel %vm229_vm10, %v213_v16, %v216_v17  ;;  %v234_v23 = vsel %vm232_vm12, %v222_v19, 2102212464  ;;  %v237_v24 = vsel %vm229_vm10, %v216_v17, %v219_v18  ;;  %v241_v25 = vsel %vm229_vm10, %v219_v18, %v222_v19 }
  0xd5   :  { %v235_v26 = vsel %vm231_vm11, %v219_v18, %v234_v23  ;;  %v238_v27 = vsel %vm232_vm12, %v225_v20, 920167782  ;;  %v242_v29 = vsel %vm232_vm12, %v228_v21, 1326507024  ;;  %v461_v46 = vshll.u32 %v936_v2, %v1038_v54 }
  0xd6   :  { %v239_v30 = vsel %vm231_vm11, %v222_v19, %v238_v27  ;;  %v243_v31 = vsel %vm231_vm11, %v225_v20, %v242_v29  ;;  %v236_v37 = vsel %vm230_vm13, %v233_v22, %v235_v26  ;;  %v462_v47 = vshrl.u32 %v937_v4, %v456_v63 }
  0xd7   :  { %v240_v39 = vsel %vm230_vm13, %v237_v24, %v239_v30  ;;  %v244_v40 = vsel %vm230_vm13, %v241_v25, %v243_v31  ;;  %v464_v48 = vshll.u32 %v937_v4, %v1038_v54  ;;  %v465_v49 = vshrl.u32 %v938_v8, %v456_v63 }
  0xd8   :  { %v1070_v42 = vmul.u32.u64.low %v1046_v61, %v244_v40  ;;  %v1071_v43 = vmul.u32.u64.high %v1046_v61, %v244_v40, %v1070_v42  ;;  %v1074_v44 = vmul.u32.u64.low %v1046_v61, %v240_v39  ;;  %v1075_v45 = vmul.u32.u64.high %v1046_v61, %v240_v39, %v1074_v44 }
  0xd9   :  { %v460_v50 = vor.u32 %v459_v36, %v458_v41  ;;  %v467_v52 = vshll.u32 %v938_v8, %v1038_v54  ;;  %v468_v53 = vshrl.u32 %v939_v11, %v456_v63  ;;  %v471_v55 = vshrl.u32 %v940_v14, %v456_v63 }
  0xda   :  { %v457_v58 = vshrl.u32 %v935_v0, %v456_v63  ;;  %v463_v60 = vor.u32 %v462_v47, %v461_v46  ;;  %v466_v62 = vor.u32 %v465_v49, %v464_v48  ;;  %v470_v1 = vshll.u32 %v939_v11, %v1038_v54  ;;  %v1139_v46 = vpop.permute.xlu1 %803 }
  0xdb   :  { %v252_v3 = vmul.u32 %v1046_v61, %v236_v37  ;;  %vm254_vm15 = vc.u32 %v1071_v43, %v1074_v44  ;;  %v255_v5 = vadd.s32 1, %v1075_v45  ;;  %v469_v6 = vor.u32 %v468_v53, %v467_v52 }
  0xdc   :  { %v472_v7 = vor.u32 %v471_v55, %v470_v1  ;;  %vm473_vm0 = vcmp.lt.s32.totalorder %v1044_v59, 1  ;;  %vm475_vm1 = vcmp.lt.s32.totalorder %v1044_v59, 3  ;;  %vm476_vm2 = vcmp.lt.s32.totalorder %v1044_v59, 4 }
  0xdd   :  { %v256_v63 = vsel %vm254_vm15, %v255_v5, %v1075_v45  ;;  %v478_v9 = vsel %vm476_vm2, %v466_v62, 2102212464  ;;  %v481_v54 = vsel %vm473_vm0, %v460_v50, %v463_v60  ;;  %v482_v61 = vsel %vm476_vm2, %v469_v6, 920167782 }
  0xde   :  { %v257_v10 = vadd.s32 %v256_v63, %v252_v3  ;;  %vm474_vm3 = vcmp.lt.s32.totalorder %v1044_v59, 2  ;;  %v483_v12 = vsel %vm475_vm1, %v466_v62, %v482_v61  ;;  %v485_v13 = vsel %vm473_vm0, %v463_v60, %v466_v62 }
  0xdf   :  { %v347_v15 = vadd.s32 1, %v1040_v56  ;;  %v484_v16 = vsel %vm474_vm3, %v481_v54, %v483_v12  ;;  %v486_v17 = vsel %vm476_vm2, %v472_v7, 1326507024  ;;  %v489_v18 = vshll.u32 %v449_v35, 8 }
  0xe0   :  { %v258_v19 = vadd.s32 536870912, %v257_v10  ;;  %v477_v20 = vsel %vm473_vm0, %v457_v58, %v460_v50  ;;  %v479_v21 = vsel %vm475_vm1, %v463_v60, %v478_v9  ;;  %v487_v22 = vsel %vm475_vm1, %v469_v6, %v486_v17 }
  0xe1   :  { %v106_v23 = vsel %vm105_vm14, %v1042_v57, 0  ;;  %v488_v56 = vsel %vm474_vm3, %v485_v13, %v487_v22  ;;  %v1120_v24 = vmul.u32.u64.low %v489_v18, %v484_v16  ;;  %v1121_v25 = vmul.u32.u64.high %v489_v18, %v484_v16, %v1120_v24 }
  0xe2   :  { %v1124_v26 = vshrl.u32 %v258_v19, 30  ;;  %v1126_v27 = vmul.u32.u64.low %v489_v18, %v488_v56  ;;  %v1127_v29 = vmul.u32.u64.high %v489_v18, %v488_v56, %v1126_v27  ;;  %v480_v30 = vsel %vm474_vm3, %v477_v20, %v479_v21 }
  0xe3   :  { %v108_v31 = vand.u32 31, %v106_v23  ;;  %vm348_vm4 = vcmp.gt.s32.totalorder %v347_v15, 0  ;;  %v499_v57 = vadd.s32 1, %v1121_v25  ;;  %v496_v37 = vmul.u32 %v489_v18, %v480_v30 }
  0xe4   :  { %v260_v35 = vshll.u32 %v1124_v26, 30  ;;  %vm498_vm5 = vc.u32 %v1127_v29, %v1120_v24  ;;  %v94_v39 = vand.u32 2147483647, %v1019_v28  ;;  %v1137_v41 = vsel %vm348_vm4, %v347_v15, 0 }
  0xe5   :  { %v500_v40 = vsel %vm498_vm5, %v499_v57, %v1121_v25  ;;  %v109_v42 = vsub.s32 32, %v108_v31  ;;  %v337_v49 = vand.u32 2147483647, %v1028_v34  ;;  %v1145_v50 = vand.u32 31, %v1137_v41 }
  0xe6   :  { %v261_v36 = vsub.s32 %v257_v10, %v260_v35  ;;  %v501_v45 = vadd.s32 %v500_v40, %v496_v37  ;;  %v101_v48 = vand.u32 8388607, %v94_v39  ;;  %v1147_v52 = vshrl.u32 %v106_v23, 5 }
  0xe7   :  { %v806_v53 = vunpack.i.h.bf16 %v1139_v46  ;;  %v253_v58 = vadd.s32 %v1074_v44, %v1071_v43  ;;  %v118_v62 = vshrl.u32 %v938_v8, %v109_v42  ;;  %v121_v1 = vshrl.u32 %v939_v11, %v109_v42 }
  0xe8   :  { %v263_v59 = vsub.s32 0, %v261_v36  ;;  %v502_v55 = vadd.s32 536870912, %v501_v45  ;;  %v112_v5 = vshrl.u32 %v936_v2, %v109_v42  ;;  %v115_v6 = vshrl.u32 %v937_v4, %v109_v42 }
  0xe9   :  { %v117_v7 = vshll.u32 %v937_v4, %v108_v31  ;;  %v102_v9 = vor.u32 8388608, %v101_v48  ;;  %v120_v54 = vshll.u32 %v938_v8, %v108_v31  ;;  %v124_v61 = vshrl.u32 %v940_v14, %v109_v42 }
  0xea   :  { %v719_v47 = vmin.u32 %v263_v59, %v261_v36  ;;  %v1154_v3 = vshrl.u32 %v502_v55, 30  ;;  %v111_v44 = vshll.u32 %v935_v0, %v108_v31  ;;  %v114_v10 = vshll.u32 %v936_v2, %v108_v31 }
  0xeb   :  { %v119_v12 = vor.u32 %v118_v62, %v117_v7  ;;  %v283_v13 = vsub.s32 4, %v1124_v26  ;;  %v122_v15 = vor.u32 %v121_v1, %v120_v54  ;;  %v123_v16 = vshll.u32 %v939_v11, %v108_v31 }
  0xec   :  { %v265_v60 = vclz %v719_v47  ;;  %v504_v43 = vshll.u32 %v1154_v3, 30  ;;  %v113_v19 = vor.u32 %v112_v5, %v111_v44  ;;  %v116_v20 = vor.u32 %v115_v6, %v114_v10 }
  0xed   :  { %v125_v23 = vor.u32 %v124_v61, %v123_v16  ;;  %vm129_vm8 = vcmp.lt.s32.totalorder %v1147_v52, 4  ;;  %vm126_vm9 = vcmp.lt.s32.totalorder %v1147_v52, 1  ;;  %vm128_vm10 = vcmp.lt.s32.totalorder %v1147_v52, 3 }
  0xee   :  { %v720_v63 = vadd.s32 4294967294, %v265_v60  ;;  %v1167_v18 = vsub.s32 %v501_v45, %v504_v43  ;;  %v131_v25 = vsel %vm129_vm8, %v119_v12, 2102212464  ;;  %vm1177_vm11 = vcmp.le.f32.partialorder %v197_v38, 0.7853982 }
  0xef   :  { %v135_v57 = vsel %vm129_vm8, %v122_v15, 920167782  ;;  %v110_v40 = vshrl.u32 %v935_v0, %v109_v42  ;;  %v134_v59 = vsel %vm126_vm9, %v113_v19, %v116_v20  ;;  %v139_v48 = vsel %vm129_vm8, %v125_v23, 1326507024 }
  0xf0   :  { %vm721_vm7 = vcmp.lt.s32.totalorder %v720_v63, 0  ;;  %v507_v56 = vsub.s32 0, %v1167_v18  ;;  %v136_v45 = vsel %vm128_vm10, %v119_v12, %v135_v57  ;;  %vm127_vm12 = vcmp.lt.s32.totalorder %v1147_v52, 2 }
  0xf1   :  { %v268_v17 = vsel %vm721_vm7, 0, %v720_v63  ;;  %v130_v42 = vsel %vm126_vm9, %v110_v40, %v113_v19  ;;  %v137_v62 = vsel %vm127_vm12, %v134_v59, %v136_v45  ;;  %v140_v1 = vsel %vm128_vm10, %v122_v15, %v139_v48 }
  0xf2   :  { %v269_v21 = vsub.s32 32, %v268_v17  ;;  %v273_v22 = vsub.s32 4294967266, %v268_v17  ;;  %v270_v30 = vshll.u32 %v261_v36, %v268_v17  ;;  %v729_v37 = vmin.u32 %v507_v56, %v1167_v18 }
  0xf3   :  { %v138_v36 = vsel %vm126_vm9, %v116_v20, %v119_v12  ;;  %v142_v5 = vshll.u32 %v102_v9, 8  ;;  %v1201_v6 = vsub.s32 32, %v1145_v50  ;;  %v284_v7 = vsel %vm199_vm6, %v283_v13, %v1124_v26 }
  0xf4   :  { %v271_v31 = vshrl.u32 %v253_v58, %v269_v21  ;;  %v274_v35 = vadd.s32 127, %v273_v22  ;;  %v509_v55 = vclz %v729_v37  ;;  %v132_v58 = vsel %vm128_vm10, %v116_v20, %v131_v25 }
  0xf5   :  { %v141_v54 = vsel %vm127_vm12, %v138_v36, %v140_v1  ;;  %v133_v12 = vsel %vm127_vm12, %v130_v42, %v132_v58  ;;  %v1209_v16 = vmul.u32.u64.low %v142_v5, %v137_v62  ;;  %v1210_v52 = vmul.u32.u64.high %v142_v5, %v137_v62, %v1209_v16 }
  0xf6   :  { %v272_v38 = vor.u32 %v271_v31, %v270_v30  ;;  %v275_v47 = vshll.u32 %v274_v35, 23  ;;  %v730_v63 = vadd.s32 4294967294, %v509_v55  ;;  %v1214_v9 = vshrl.u32 %v1137_v41, 5 }
  0xf7   :  { %v1206_v44 = vmul.u32.u64.low %v142_v5, %v141_v54  ;;  %v1207_v10 = vmul.u32.u64.high %v142_v5, %v141_v54, %v1206_v44  ;;  %v497_v26 = vadd.s32 %v1120_v24, %v1127_v29  ;;  %v286_v17 = vsel %vm1177_vm11, 0, %v284_v7 }
  0xf8   :  { %v276_v60 = vor.u32 4788187, %v275_v47  ;;  %v279_v43 = vcvt.s32.f32 %v272_v38  ;;  %vm731_vm13 = vcmp.lt.s32.totalorder %v730_v63, 0  ;;  %v344_v21 = vand.u32 8388607, %v337_v49 }
  0xf9   :  { %v512_v13 = vsel %vm731_vm13, 0, %v730_v63  ;;  %v149_v23 = vmul.u32 %v142_v5, %v133_v12  ;;  %vm151_vm14 = vc.u32 %v1207_v10, %v1209_v16  ;;  %v355_v41 = vshrl.u32 %v936_v2, %v1201_v6 }
  0xfa   :  { %v277_v61 = vand.u32 2147483647, %v276_v60  ;;  %v513_v19 = vsub.s32 32, %v512_v13  ;;  %v517_v20 = vsub.s32 4294967266, %v512_v13  ;;  %v514_v56 = vshll.u32 %v1167_v18, %v512_v13 }
  0xfb   :  { %v152_v25 = vadd.s32 1, %v1210_v52  ;;  %v354_v31 = vshll.u32 %v935_v0, %v1145_v50  ;;  %v358_v35 = vshrl.u32 %v937_v4, %v1201_v6  ;;  %v361_v57 = vshrl.u32 %v938_v8, %v1201_v6 }
  0xfc   :  { %v280_v15 = vmul.f32 %v279_v43, %v277_v61  ;;  %v515_v24 = vshrl.u32 %v497_v26, %v513_v19  ;;  %v518_v29 = vadd.s32 127, %v517_v20  ;;  %vm443_vm15 = vcmp.lt.s32.totalorder %v1024_v32, 0  ;;  %v1288_v20 = vpop.permute.xlu0 %797 }
  0xfd   :  { %v153_v59 = vsel %vm151_vm14, %v152_v25, %v1210_v52  ;;  %v356_v38 = vor.u32 %v355_v41, %v354_v31  ;;  %v357_v47 = vshll.u32 %v936_v2, %v1145_v50  ;;  %vm1245_vm0 = vcmp.le.f32.partialorder %v441_v51, 0.7853982  ;;  %v1310_v31 = vld [vmem:[%s1458_s2 + $0x1] ss:$0 sm:$0xff] }
  0xfe   :  { %v281_v22 = vxor.u32 2147483648, %v280_v15  ;;  %v516_v37 = vor.u32 %v515_v24, %v514_v56  ;;  %v519_v40 = vshll.u32 %v518_v29, 23  ;;  %v154_v45 = vadd.s32 %v153_v59, %v149_v23 }
  0xff   :  { %v360_v48 = vshll.u32 %v937_v4, %v1145_v50  ;;  %v363_v55 = vshll.u32 %v938_v8, %v1145_v50  ;;  %v364_v58 = vshrl.u32 %v939_v11, %v1201_v6  ;;  %v366_v2 = vshll.u32 %v939_v11, %v1145_v50  ;;  %v1265_v11 = vpop.permute.xlu1 %808 }
 0x100   :  { %v282_v30 = vsel %vm199_vm6, %v281_v22, %v280_v15  ;;  %v520_v27 = vor.u32 4788187, %v519_v40  ;;  %v155_v42 = vadd.s32 536870912, %v154_v45  ;;  %v367_v51 = vshrl.u32 %v940_v14, %v1201_v6 }
 0x101   :  { %v285_v18 = vsel %vm1177_vm11, %v1026_v33, %v282_v30  ;;  %v523_v62 = vcvt.s32.f32 %v516_v37  ;;  %v359_v1 = vor.u32 %v358_v35, %v357_v47  ;;  %v362_v5 = vor.u32 %v361_v57, %v360_v48 }
 0x102   :  { %821 = vcosq.f32 %v285_v18  ;;  %v521_v60 = vand.u32 2147483647, %v520_v27  ;;  %v527_v7 = vsub.s32 4, %v1154_v3  ;;  %v1260_v4 = vshrl.u32 %v155_v42, 30  ;;  %v1330_v42 = vld [vmem:[%s1458_s2] ss:$0 sm:$0xff] }
 0x103   :  { %823 = vsinq.f32 %v285_v18  ;;  %v365_v63 = vor.u32 %v364_v58, %v363_v55  ;;  %v368_v8 = vor.u32 %v367_v51, %v366_v2  ;;  %v1262_v54 = vand.u32 3, %v286_v17  ;;  %v1312_v57 = vpop.permute.xlu1 %307  ;;  %v1338_v2 = vld [vmem:[%s1458_s2 + $0x2] ss:$0 sm:$0xff] }
 0x104   :  { %v524_v61 = vmul.f32 %v523_v62, %v521_v60  ;;  %v345_v43 = vor.u32 8388608, %v344_v21  ;;  %vm372_vm1 = vcmp.lt.s32.totalorder %v1214_v9, 4  ;;  %v157_v14 = vshll.u32 %v1260_v4, 30 }
 0x105   :  { %vm369_vm2 = vcmp.lt.s32.totalorder %v1214_v9, 1  ;;  %vm371_vm3 = vcmp.lt.s32.totalorder %v1214_v9, 3  ;;  %v378_v50 = vsel %vm372_vm1, %v365_v63, 920167782  ;;  %v528_v26 = vsel %vm443_vm15, %v527_v7, %v1154_v3 }
 0x106   :  { %v525_v44 = vxor.u32 2147483648, %v524_v61  ;;  %v377_v12 = vsel %vm369_vm2, %v356_v38, %v359_v1  ;;  %v379_v52 = vsel %vm371_vm3, %v362_v5, %v378_v50  ;;  %v381_v15 = vsel %vm369_vm2, %v359_v1, %v362_v5 }
 0x107   :  { %v1281_v13 = vsub.s32 %v154_v45, %v157_v14  ;;  %vm370_vm4 = vcmp.lt.s32.totalorder %v1214_v9, 2  ;;  %v382_v17 = vsel %vm372_vm1, %v368_v8, 1326507024  ;;  %v374_v21 = vsel %vm372_vm1, %v362_v5, 2102212464 }
 0x108   :  { %v526_v19 = vsel %vm443_vm15, %v525_v44, %v524_v61  ;;  %v383_v22 = vsel %vm371_vm3, %v365_v63, %v382_v17  ;;  %v385_v23 = vshll.u32 %v345_v43, 8  ;;  %v380_v56 = vsel %vm370_vm4, %v377_v12, %v379_v52  ;;  %v1352_v61 = vpop.permute.xlu1 %816 }
 0x109   :  { %v529_v3 = vsel %vm1245_vm0, %v1024_v32, %v526_v19  ;;  %v160_v41 = vsub.s32 0, %v1281_v13  ;;  %v384_v24 = vsel %vm370_vm4, %v381_v15, %v383_v22  ;;  %v353_v29 = vshrl.u32 %v935_v0, %v1201_v6 }
 0x10a   :  { %825 = vcosq.f32 %v529_v3  ;;  %v1304_v25 = vmul.u32.u64.low %v385_v23, %v384_v24  ;;  %v1305_v30 = vmul.u32.u64.high %v385_v23, %v384_v24, %v1304_v25  ;;  %v64_v35 = vlaneseq }
 0x10b   :  { %827 = vsinq.f32 %v529_v3  ;;  %v800_v18 = vunpack.i.h.bf16 %v1288_v20  ;;  %v715_v37 = vmin.u32 %v160_v41, %v1281_v13  ;;  %v373_v0 = vsel %vm369_vm2, %v353_v29, %v356_v38 }
 0x10c   :  { %v375_v6 = vsel %vm371_vm3, %v359_v1, %v374_v21  ;;  %v1320_v59 = vmul.u32.u64.low %v385_v23, %v380_v56  ;;  %v1321_v45 = vmul.u32.u64.high %v385_v23, %v380_v56, %v1320_v59  ;;  %v811_v27 = vunpack.i.h.bf16 %v1265_v11 }
 0x10d   :  { %v530_v55 = vsel %vm1245_vm0, 0, %v528_v26  ;;  %v162_v38 = vclz %v715_v37  ;;  %v601_v58 = vmul.f32 %v806_v53, %v1310_v31  ;;  %vm292_vm5 = vcmp.eq.s32.totalorder %v1262_v54, 0 }
 0x10e   :  { %vm295_vm6 = vcmp.eq.s32.totalorder %v1262_v54, 2  ;;  %v376_v62 = vsel %vm370_vm4, %v373_v0, %v375_v6  ;;  %vm394_vm7 = vc.u32 %v1305_v30, %v1320_v59  ;;  %v534_v53 = vadd.s32 3, %v530_v55 }
 0x10f   :  { %v822_v40 = vpop.eup %821  ;;  %v716_v60 = vadd.s32 4294967294, %v162_v38  ;;  %v576_v5 = vmul.f32 %v800_v18, %v1330_v42  ;;  %v395_v7 = vadd.s32 1, %v1321_v45  ;;  %v626_v63 = vmul.f32 %v811_v27, %v1338_v2 }
 0x110   :  { %v824_v47 = vpop.eup %823  ;;  %v296_v48 = vxor.u32 2147483648, %v822_v40  ;;  %v1349_v8 = vand.u32 127, %v64_v35  ;;  %vm291_vm8 = vcmp.lt.s32.totalorder %v1262_v54, 2  ;;  %v392_v14 = vmul.u32 %v385_v23, %v376_v62  ;;  %v1363_v23 = vld [vmem:[%s1458_s2 + $0x3] ss:$0 sm:$0xff]  ;;  %s923_s2 = smov 0  }
 0x111   :  { %v293_v51 = vxor.u32 2147483648, %v824_v47  ;;  %vm717_vm9 = vcmp.lt.s32.totalorder %v716_v60, 0  ;;  %v396_v50 = vsel %vm394_vm7, %v395_v7, %v1321_v45  ;;  %vm289_vm10 = vweird.f32 %v1026_v33 }
 0x112   :  { %v297_v36 = vsel %vm295_vm6, %v296_v48, %v824_v47  ;;  %v165_v43 = vsel %vm717_vm9, 0, %v716_v60  ;;  %v150_v44 = vadd.s32 %v1209_v16, %v1207_v10  ;;  %v535_v15 = vand.u32 3, %v534_v53 }
 0x113   :  { %v294_v1 = vsel %vm292_vm5, %v822_v40, %v293_v51  ;;  %v166_v12 = vsub.s32 32, %v165_v43  ;;  %v170_v52 = vsub.s32 4294967266, %v165_v43  ;;  %v603_v26 = vadd.f32 %v601_v58, %v576_v5 }
 0x114   :  { %v298_v9 = vsel %vm291_vm8, %v294_v1, %v297_v36  ;;  %v819_v17 = vunpack.i.h.bf16 %v1352_v61  ;;  %v397_v54 = vadd.s32 %v396_v50, %v392_v14  ;;  %v167_v21 = vshll.u32 %v1281_v13, %v165_v43 }
 0x115   :  { %v299_v19 = vsel %vm289_vm10, nan, %v298_v9  ;;  %v168_v22 = vshrl.u32 %v150_v44, %v166_v12  ;;  %v171_v3 = vadd.s32 127, %v170_v52  ;;  %vm66_vm11 = vcmp.eq.s32.totalorder %v1349_v8, 31 }
 0x116   :  { %v398_v10 = vadd.s32 536870912, %v397_v54  ;;  %v301_v13 = vsel %vm66_vm11, %v1026_v33, %v299_v19  ;;  %v628_v25 = vadd.f32 %v626_v63, %v603_v26  ;;  %vm540_vm12 = vcmp.eq.s32.totalorder %v535_v15, 2 }
 0x117   :  { %v826_v16 = vpop.eup %825  ;;  %v169_v41 = vor.u32 %v168_v22, %v167_v21  ;;  %v172_v56 = vshll.u32 %v171_v3, 23  ;;  %v651_v37 = vmul.f32 %v819_v17, %v1363_v23  ;;  %vm536_vm13 = vcmp.lt.s32.totalorder %v535_v15, 2 }
 0x118   :  { %v828_v24 = vpop.eup %827  ;;  %v541_v29 = vxor.u32 2147483648, %v826_v16  ;;  %v1375_v35 = vshrl.u32 %v398_v10, 30  ;;  %vm537_vm14 = vcmp.eq.s32.totalorder %v535_v15, 0  ;;  %v311_v33 = vmul.f32 %v1312_v57, %v301_v13 }
 0x119   :  { %v538_v18 = vxor.u32 2147483648, %v828_v24  ;;  %v173_v40 = vor.u32 4788187, %v172_v56  ;;  %v176_v27 = vcvt.s32.f32 %v169_v41  ;;  %vm533_vm15 = vweird.f32 %v1024_v32 }
 0x11a   :  { %v542_v0 = vsel %vm540_vm12, %v541_v29, %v828_v24  ;;  %v400_v6 = vshll.u32 %v1375_v35, 30  ;;  %v312_v36 = vstv %s1365_s14  ;;  %v653_v1 = vadd.f32 %v651_v37, %v628_v25 }
 0x11b   :  { %v539_v45 = vsel %vm537_vm14, %v826_v16, %v538_v18  ;;  %v174_v47 = vand.u32 2147483647, %v173_v40  ;;  %v314_v5 = vmul.f32 %v312_v36, %v311_v33  ;;  %v654_v7 = vstv %s1368_s15 }
 0x11c   :  { %v543_v48 = vsel %vm536_vm13, %v539_v45, %v542_v0  ;;  %v401_v55 = vsub.s32 %v397_v54, %v400_v6  ;;  %v549_v9 = vstv %s1373_s16  ;;  %vm96_vm0 = vcmp.lt.s32.totalorder %v1019_v28, 0 }
 0x11d   :  { %v544_v38 = vsel %vm533_vm15, nan, %v543_v48  ;;  %v177_v58 = vmul.f32 %v176_v27, %v174_v47  ;;  %vm1399_vm1 = vcmp.le.f32.partialorder %v94_v39, 0.7853982  ;;  %v393_v17 = vadd.s32 %v1320_v59, %v1305_v30 }
 0x11e   :  { %v546_v51 = vsel %vm66_vm11, %v1024_v32, %v544_v38  ;;  %v403_v60 = vsub.s32 0, %v401_v55  ;;  %v656_v32 = vmul.f32 %v654_v7, %v653_v1  ;;  %v180_v16 = vsub.s32 4, %v1260_v4 }
 0x11f   :  { %v548_v62 = vmul.f32 %v546_v51, %v1312_v57  ;;  %v178_v53 = vxor.u32 2147483648, %v177_v58  ;;  %vm339_vm3 = vcmp.lt.s32.totalorder %v1028_v34, 0  ;;  %v423_v18 = vsub.s32 4, %v1375_v35 }
 0x120   :  { %v725_v63 = vmin.u32 %v403_v60, %v401_v55  ;;  %v181_v13 = vsel %vm96_vm0, %v180_v16, %v1260_v4  ;;  %vm1420_vm4 = vcmp.le.f32.partialorder %v337_v49, 0.7853982  ;;  %v805_v27 = vunpack.i.l.bf16 %v1139_v46 }
 0x121   :  { %v551_v43 = vmul.f32 %v549_v9, %v548_v62  ;;  %v179_v14 = vsel %vm96_vm0, %v178_v53, %v177_v58  ;;  %v183_v59 = vsel %vm1399_vm1, 0, %v181_v13  ;;  %v424_v47 = vsel %vm339_vm3, %v423_v18, %v1375_v35 }
 0x122   :  { %v405_v50 = vclz %v725_v63  ;;  %v182_v52 = vsel %vm1399_vm1, %v1019_v28, %v179_v14  ;;  %v187_v6 = vand.u32 3, %v183_v59  ;;  %v799_v48 = vunpack.i.l.bf16 %v1288_v20 }
 0x123   :  { %v553_v44 = vadd.f32 %v551_v43, %v314_v5  ;;  %829 = vcosq.f32 %v182_v52  ;;  %v426_v49 = vsel %vm1420_vm4, 0, %v424_v47  ;;  %v600_v51 = vmul.f32 %v805_v27, %v1310_v31 }
 0x124   :  { %v726_v12 = vadd.s32 4294967294, %v405_v50  ;;  %831 = vsinq.f32 %v182_v52  ;;  %vm189_vm5 = vcmp.eq.s32.totalorder %v187_v6, 0  ;;  %vm192_vm6 = vcmp.eq.s32.totalorder %v187_v6, 2 }
 0x125   :  { %v1406_v15 = vadd.f32 %v656_v32, %v553_v44  ;;  %vm188_vm7 = vcmp.lt.s32.totalorder %v187_v6, 2  ;;  %v430_v58 = vadd.s32 3, %v426_v49  ;;  %v810_v60 = vunpack.i.l.bf16 %v1265_v11  ;;  %v304_v11 = vpop.permute.xlu0 %303 }
 0x126   :  { %vm727_vm2 = vcmp.lt.s32.totalorder %v726_v12, 0  ;;  %v575_v35 = vmul.f32 %v799_v48, %v1330_v42  ;;  %vm186_vm8 = vweird.f32 %v1019_v28  ;;  %v818_v63 = vunpack.i.l.bf16 %v1352_v61 }
 0x127   :  { %v408_v26 = vsel %vm727_vm2, 0, %v726_v12  ;;  %v431_v20 = vand.u32 3, %v430_v58  ;;  %v625_v1 = vmul.f32 %v810_v60, %v1338_v2  ;;  %vm429_vm13 = vweird.f32 %v1028_v34 }
 0x128   :  { %v409_v54 = vsub.s32 32, %v408_v26  ;;  %v413_v19 = vsub.s32 4294967266, %v408_v26  ;;  %v410_v39 = vshll.u32 %v401_v55, %v408_v26  ;;  %v602_v53 = vadd.f32 %v600_v51, %v575_v35 }
 0x129   :  { %vm436_vm9 = vcmp.eq.s32.totalorder %v431_v20, 2  ;;  %vm433_vm10 = vcmp.eq.s32.totalorder %v431_v20, 0  ;;  %v650_v2 = vmul.f32 %v818_v63, %v1363_v23  ;;  %vm432_vm12 = vcmp.lt.s32.totalorder %v431_v20, 2 }
 0x12a   :  { %v411_v21 = vshrl.u32 %v393_v17, %v409_v54  ;;  %v414_v22 = vadd.s32 127, %v413_v19  ;;  %v627_v50 = vadd.f32 %v625_v1, %v602_v53 }
 0x12c   :  { %v412_v3 = vor.u32 %v411_v21, %v410_v39  ;;  %v415_v10 = vshll.u32 %v414_v22, 23  ;;  %v652_v52 = vadd.f32 %v650_v2, %v627_v50 }
 0x12e   :  { %v416_v41 = vor.u32 4788187, %v415_v10  ;;  %v419_v24 = vcvt.s32.f32 %v412_v3  ;;  %v655_v19 = vmul.f32 %v654_v7, %v652_v52 }
 0x130   :  { %v417_v56 = vand.u32 2147483647, %v416_v41  ;;  %v830_v30 = vpop.eup %829 }
 0x131   :  { %v832_v37 = vpop.eup %831  ;;  %v193_v33 = vxor.u32 2147483648, %v830_v30 }
 0x132   :  { %v420_v29 = vmul.f32 %v419_v24, %v417_v56  ;;  %v190_v45 = vxor.u32 2147483648, %v832_v37 }
 0x133   :  { %v194_v38 = vsel %vm192_vm6, %v193_v33, %v832_v37 }
 0x134   :  { %v421_v25 = vxor.u32 2147483648, %v420_v29  ;;  %v191_v55 = vsel %vm189_vm5, %v830_v30, %v190_v45 }
 0x135   :  { %v195_v62 = vsel %vm188_vm7, %v191_v55, %v194_v38 }
 0x136   :  { %v422_v0 = vsel %vm339_vm3, %v421_v25, %v420_v29  ;;  %v196_v46 = vsel %vm186_vm8, nan, %v195_v62 }
 0x137   :  { %v425_v4 = vsel %vm1420_vm4, %v1028_v34, %v422_v0  ;;  %v300_v31 = vsel %vm66_vm11, %v1019_v28, %v196_v46 }
 0x138   :  { %833 = vcosq.f32 %v425_v4  ;;  %v310_v61 = vmul.f32 %v304_v11, %v300_v31 }
 0x139   :  { %835 = vsinq.f32 %v425_v4 }
 0x13a   :  { %v313_v26 = vmul.f32 %v312_v36, %v310_v61 }
 0x145   :  { %v834_v5 = vpop.eup %833 }
 0x146   :  { %v836_v43 = vpop.eup %835  ;;  %v437_v14 = vxor.u32 2147483648, %v834_v5 }
 0x147   :  { %v434_v42 = vxor.u32 2147483648, %v836_v43 }
 0x148   :  { %v438_v32 = vsel %vm436_vm9, %v437_v14, %v836_v43 }
 0x149   :  { %v435_v44 = vsel %vm433_vm10, %v834_v5, %v434_v42 }
 0x14a   :  { %v439_v57 = vsel %vm432_vm12, %v435_v44, %v438_v32 }
 0x14b   :  { %v440_v12 = vsel %vm429_vm13, nan, %v439_v57 }
 0x14c   :  { %v545_v28 = vsel %vm66_vm11, %v1028_v34, %v440_v12 }
 0x14d   :  { %v547_v17 = vmul.f32 %v545_v28, %v304_v11 }
 0x14f   :  { %v550_v54 = vmul.f32 %v549_v9, %v547_v17 }
 0x151   :  { %v552_v23 = vadd.f32 %v550_v54, %v313_v26 }
 0x153   :  { %v657_v39 = vadd.f32 %v655_v19, %v552_v23 }
 0x154 LB: > { %915 = dma.done.wait [#allocation3], 16  ;;  %s925_s2 = sphi %s923_s2, %s664_s2  }
 0x155   : > { %916 = vsyncadd [#allocation3], 4294967280  ;;  %s664_s2 = sadd.s32 1, %s925_s2  }
 0x156   : > { %p661_p7 = scmp.ge.s32.totalorder %s664_s2, 16  }
 0x157   :  { %v667_v34 = vld [vmem:[#allocation2] sm:$0xff] (%p661_p7)  ;;  %v668_v8 = vld [vmem:[#allocation2 + $0x8] sm:$0xff] (%p661_p7)  ;;  %s941_s17 = smov (%p661_p7), [#allocation9]  }
 0x158   :  { %663 = sbr.rel (!%p661_p7) target bundleno = 340 (0x154), region = 71  ;;  %v669_v36 = vadd.f32 (%p661_p7), %v667_v34, %v657_v39  ;;  %v670_v21 = vadd.f32 (%p661_p7), %v668_v8, %v1406_v15  ;;  %s678_s18 = sshll.u32 (%p661_p7), %s941_s17, 4  ;;  %s679_s18 = int_to_ptr.vmem [resolvable:$true] %s678_s18 }
 0x159   :  { %s883_s19 = scalar_lea.vmem (%p661_p7), %s679_s18, 256  ;;  %p888_p9 = scmp.lt.s32.totalorder (%p661_p7), %s679_s18, %s679_s18 }
 0x15a   :  { %671 = vst [vmem:[#allocation9] sm:$0xff] (%p661_p7), %v669_v36  ;;  %672 = vst [vmem:[#allocation9 + $0x8] sm:$0xff] (%p661_p7), %v670_v21  ;;  %p884_p8 = scmp.ne.s32.totalorder (%p661_p7), %s679_s18, %s883_s19  ;;  %p889_p10 = scmp.lt.s32.totalorder (%p661_p7), %s883_s19, %s883_s19 }
 0x15c   :  { %p890_p11 = por (%p661_p7), %p889_p10, %p888_p9 }
 0x15e   :  { %p891_p12 = pnand %p890_p11, %p884_p8 }
 0x160   :  { %894 = shalt.err (!%p891_p12)
}
 0x161   :  { %s942_s20 = smov 128   ;;  %s943_s21 = smov 8  }
 0x162   :  { %684 = dma.vmem_to_hbm [thread:$0]  %s679_s18, 256, %s1462_s6, [#allocation7], %s942_s20, %s942_s20, %s943_s21  }
 0x163   :  { %917 = dma.done.wait [#allocation7], 256  }
 0x164   :  { %918 = vsyncadd [#allocation7], 4294967040 }
 0x165   :  { %688 = vsyncpa [#allocation7], 1 }
 0x166   :  { %689 = vsyncpa [#allocation8], 1 }
 0x167   :  { %690 = vsyncmov [#allocation3] }
 0x16a   :  { %s691_s24 = vpop.sfrf %690 }
 0x16b   :  { %p744_p13 = scmp.ne.s32.totalorder %s691_s24, 0 }
 0x16d   :  { %695 = shalt.err (%p744_p13)  }

</bundles_post_ra>
